<compile_context>
chip_gen: v7x
topology: tpu7x:2x2x1
jax: 0.10.0
libtpu: 0.0.40
codegen_flags: <defaults>
</compile_context>

<pallas_src>
import jax
import jax.numpy as jnp
from jax.experimental import pallas as pl
from jax.experimental.pallas import tpu as pltpu

_LANE = 128


def actor_kernel(s_ref, w1_ref, b1_ref, w2_ref, b2_ref, w3_ref, b3_ref,
                 mu_ref):
    """Feature-major: features on sublanes, batch on lanes.

    s_ref : [N_S, TB]  (bf16 or f32, streamed)
    w1    : [32, N_S]  (same dtype as s, VMEM-resident)
    w2    : [16, 32]   f32
    w3    : [N_A, 16]  f32 (random_vector pre-folded)
    b*    : [H, 1]     f32 (broadcast along lanes)
    mu_ref: [N_A, TB]  f32 (lane-dense stores)
    """
    # fc1 + tanh (fp32 accumulation on the MXU)
    x = jnp.dot(w1_ref[...], s_ref[...], preferred_element_type=jnp.float32)
    x = jnp.tanh(x + b1_ref[...])
    # fc2 + tanh (all fp32)
    x = jnp.dot(w2_ref[...], x, preferred_element_type=jnp.float32)
    x = jnp.tanh(x + b2_ref[...])
    # mu head (random_vector already folded into w3)
    z = jnp.dot(w3_ref[...], x, preferred_element_type=jnp.float32)
    z = z + b3_ref[...]
    # sigmoid(z) = 0.5*tanh(0.5*z) + 0.5 -> one EUP op, no divide.
    mu_ref[...] = 0.5 * jnp.tanh(0.5 * z) + 0.5


def _round_up(x, m):
    return ((x + m - 1) // m) * m


def actor_forward_t(s_t, params, random_vector, *, block_b=32768,
                    use_bf16=True, vmem_limit_bytes=None):
    """Feature-major entry point: s_t [N_S, B] -> mu_t [N_A, B] float32.

    block_b: max batch tile in rows; rounded up to a multiple of 128 (lane
             width).  Sweep larger on v6e; keep ~<=32768 on v5e/v7x unless
             vmem_limit_bytes is raised.
    use_bf16: cast only the streamed s (and w1 to match) to bf16; fp32
              accumulate.  Safe on all generations (MXU is bf16-native and
              no bf16 elementwise math is emitted).
    """
    w1, b1, w2, b2, w3, b3 = params          # w*: [out, in], b*: [out, 1]
    N_S, B = s_t.shape
    H1, H2 = w1.shape[0], w2.shape[0]
    N_A = w3.shape[0]

    # Fold the constant random_vector into the mu-head weights:
    # W3 @ (rv * x) == (W3 * rv[None, :]) @ x
    w3_eff = w3 * random_vector.reshape(1, -1)

    mm_dtype = jnp.bfloat16 if use_bf16 else jnp.float32
    s_in = s_t.astype(mm_dtype)
    w1_in = w1.astype(mm_dtype)   # matches the streamed operand's dtype
    # w2/w3/biases stay fp32: they are VMEM-resident, shrinking them saves no
    # HBM bytes and would only add casts / precision loss.

    # --- batch tiling along the lane axis; no host-side padding -------------
    block_b = max(_LANE, _round_up(block_b, _LANE))
    if B <= 2 * _LANE:
        tb = B                                  # single full-extent block
    elif B <= block_b:
        # Aim for >= ~4 grid steps so the pipeline overlaps and both v7x
        # TensorCores get work; keep the lane dim a multiple of 128.
        tb = min(block_b, _round_up(pl.cdiv(B, 4), _LANE))
    else:
        tb = block_b
    grid = (pl.cdiv(B, tb),)     # Pallas clips the partial last block.

    def const_spec(arr):
        # Full-array block, constant index -> stays resident in VMEM across
        # all grid steps (no re-DMA of the tiny weights).
        return pl.BlockSpec(arr.shape, lambda i: (0, 0))

    in_specs = [
        pl.BlockSpec((N_S, tb), lambda i: (0, i)),   # s_t: streamed per tile
        const_spec(w1_in), const_spec(b1),
        const_spec(w2), const_spec(b2),
        const_spec(w3_eff), const_spec(b3),
    ]
    out_specs = pl.BlockSpec((N_A, tb), lambda i: (0, i))  # lane-dense stores

    weight_bytes = sum(int(a.size) * a.dtype.itemsize
                       for a in (w1_in, b1, w2, b2, w3_eff, b3))
    cost = pl.CostEstimate(
        flops=2 * B * (N_S * H1 + H1 * H2 + H2 * N_A),
        transcendentals=B * (H1 + H2 + N_A),
        bytes_accessed=B * N_S * s_in.dtype.itemsize + B * N_A * 4
        + weight_bytes,
    )

    mu_t = pl.pallas_call(
        actor_kernel,
        out_shape=jax.ShapeDtypeStruct((N_A, B), jnp.float32),
        grid=grid,
        in_specs=in_specs,
        out_specs=out_specs,
        compiler_params=pltpu.CompilerParams(
            dimension_semantics=("parallel",),   # shard batch over v7x's 2 TCs
            vmem_limit_bytes=vmem_limit_bytes),
        cost_estimate=cost,
    )(s_in, w1_in, b1, w2, b2, w3_eff, b3)
    return mu_t


def actor_forward(s, params, random_vector, *, block_b=32768, use_bf16=True,
                  vmem_limit_bytes=None):
    """PyTorch-layout wrapper: s [B, N_S] float32 -> mu [B, N_A] float32."""
    mu_t = actor_forward_t(s.T, params, random_vector, block_b=block_b,
                           use_bf16=use_bf16,
                           vmem_limit_bytes=vmem_limit_bytes)
    return mu_t.T
    # TODO(synk): callers that can keep s feature-major ([N_S, B]) should use
    # actor_forward_t directly and skip both wrapper transposes.


def init_actor_params(key, N_S, N_A):
    """Deterministic init matching Actor.set_init: W ~ N(0, 0.1), b = 0.

    Weights stored PyTorch-style [out, in]; biases as [out, 1] columns.
    """
    k1, k2, k3 = jax.random.split(key, 3)
    w1 = 0.1 * jax.random.normal(k1, (32, N_S), jnp.float32)
    b1 = jnp.zeros((32, 1), jnp.float32)
    w2 = 0.1 * jax.random.normal(k2, (16, 32), jnp.float32)
    b2 = jnp.zeros((16, 1), jnp.float32)
    w3 = 0.1 * jax.random.normal(k3, (N_A, 16), jnp.float32)
    b3 = jnp.zeros((N_A, 1), jnp.float32)
    return (w1, b1, w2, b2, w3, b3)


def init_random_vector(key, into_last_layer=16):
    """random_vetor = rand(16)*4-2; where(rand(16) < 0.5, rv, ones)."""
    ka, kb = jax.random.split(key)
    rv = jax.random.uniform(ka, (into_last_layer,), jnp.float32) * 4.0 - 2.0
    gate = jax.random.uniform(kb, (into_last_layer,), jnp.float32)
    return jnp.where(gate < 0.5, rv, jnp.ones_like(rv))


def actor_ref(s, params, random_vector):
    """Pure-JAX fp32 reference of the PyTorch forward (batch-major)."""
    w1, b1, w2, b2, w3, b3 = params
    x = jnp.tanh(s @ w1.T + b1.reshape(1, -1))
    x = jnp.tanh(x @ w2.T + b2.reshape(1, -1))
    x = x * random_vector.reshape(1, -1)
    return jax.nn.sigmoid(x @ w3.T + b3.reshape(1, -1))


if __name__ == "__main__":
    N_S, N_A, BATCH = 8, 4, 2

    key = jax.random.PRNGKey(0)
    k_params, k_rv, k_in, k_big = jax.random.split(key, 4)

    params = init_actor_params(k_params, N_S, N_A)
    random_vector = init_random_vector(k_rv, into_last_layer=16)

    # --- small demo batch (fp32 path, exact vs. fp32 reference) --------------
    s = jax.random.normal(k_in, (BATCH, N_S), jnp.float32)
    mu = jax.block_until_ready(
        actor_forward(s, params, random_vector, use_bf16=False))
    assert mu.shape == (BATCH, N_A)
    assert bool(jnp.all((mu > 0.0) & (mu < 1.0)))
    ref = actor_ref(s, params, random_vector)
    assert bool(jnp.allclose(mu, ref, atol=1e-5, rtol=1e-5))

    # --- larger ragged batch: tiled grid + clipped partial last block --------
    s_big = jax.random.normal(k_big, (1000, N_S), jnp.float32)
    ref_big = actor_ref(s_big, params, random_vector)

    # fp32 path, small tile -> 4 grid steps, last block partial (no jnp.pad).
    mu_big = jax.block_until_ready(
        actor_forward(s_big, params, random_vector, block_b=256,
                      use_bf16=False))
    assert mu_big.shape == (1000, N_A)
    assert bool(jnp.allclose(mu_big, ref_big, atol=1e-5, rtol=1e-5))

    # Default path: bf16-streamed s / w1 (halves the dominant HBM stream);
    # compare against the fp32 reference with a bf16-appropriate tolerance.
    mu_bf16 = jax.block_until_ready(
        actor_forward(s_big, params, random_vector))
    assert mu_bf16.shape == (1000, N_A)
    assert bool(jnp.allclose(mu_bf16, ref_big, atol=1e-2, rtol=1e-2))

    print("KERNEL_OK")
</pallas_src>

<mosaic_0001>
module attributes {stable_mosaic.version = 11 : i64} {
  func.func @actor_kernel(%arg0: i32, %arg1: memref<8x2xf32, #tpu.memory_space<vmem>>, %arg2: memref<32x8xf32, #tpu.memory_space<vmem>>, %arg3: memref<32x1xf32, #tpu.memory_space<vmem>>, %arg4: memref<16x32xf32, #tpu.memory_space<vmem>>, %arg5: memref<16x1xf32, #tpu.memory_space<vmem>>, %arg6: memref<4x16xf32, #tpu.memory_space<vmem>>, %arg7: memref<4x1xf32, #tpu.memory_space<vmem>>, %arg8: memref<4x2xf32, #tpu.memory_space<vmem>>) attributes {dimension_semantics = [#tpu.dimension_semantics<parallel>], iteration_bounds = array<i64: 1>, scalar_prefetch = 0 : i64, scratch_operands = 0 : i64, tpu.core_type = #tpu.core_type<tc>, window_params = [{transform_indices = @transform_0, window_bounds = array<i64: 8, 2>}, {pipeline_mode = #tpu.pipeline_mode<synchronous>, transform_indices = @transform_1, window_bounds = array<i64: 32, 8>}, {pipeline_mode = #tpu.pipeline_mode<synchronous>, transform_indices = @transform_2, window_bounds = array<i64: 32, 1>}, {pipeline_mode = #tpu.pipeline_mode<synchronous>, transform_indices = @transform_3, window_bounds = array<i64: 16, 32>}, {pipeline_mode = #tpu.pipeline_mode<synchronous>, transform_indices = @transform_4, window_bounds = array<i64: 16, 1>}, {pipeline_mode = #tpu.pipeline_mode<synchronous>, transform_indices = @transform_5, window_bounds = array<i64: 4, 16>}, {pipeline_mode = #tpu.pipeline_mode<synchronous>, transform_indices = @transform_6, window_bounds = array<i64: 4, 1>}, {transform_indices = @transform_7, window_bounds = array<i64: 4, 2>}]} {
    %c0 = arith.constant 0 : index
    %c0_0 = arith.constant 0 : index
    %0 = vector.load %arg2[%c0, %c0_0] : memref<32x8xf32, #tpu.memory_space<vmem>>, vector<32x8xf32>
    %c0_1 = arith.constant 0 : index
    %c0_2 = arith.constant 0 : index
    %1 = vector.load %arg1[%c0_1, %c0_2] : memref<8x2xf32, #tpu.memory_space<vmem>>, vector<8x2xf32>
    %cst = arith.constant dense<0.000000e+00> : vector<32x2xf32>
    %2 = tpu.matmul %0, %1, %cst {dimension_numbers = #tpu.dot_dimension_numbers<[1], [0], [0], [1], [0, 0, 1, 1], [], []>} : vector<32x8xf32>, vector<8x2xf32>, vector<32x2xf32> -> vector<32x2xf32>
    %c0_3 = arith.constant 0 : index
    %c0_4 = arith.constant 0 : index
    %3 = vector.load %arg3[%c0_3, %c0_4] : memref<32x1xf32, #tpu.memory_space<vmem>>, vector<32x1xf32>
    %4 = vector.broadcast %3 : vector<32x1xf32> to vector<32x2xf32>
    %5 = arith.addf %2, %4 : vector<32x2xf32>
    %6 = math.tanh %5 : vector<32x2xf32>
    %c0_5 = arith.constant 0 : index
    %c0_6 = arith.constant 0 : index
    %7 = vector.load %arg4[%c0_5, %c0_6] : memref<16x32xf32, #tpu.memory_space<vmem>>, vector<16x32xf32>
    %cst_7 = arith.constant dense<0.000000e+00> : vector<16x2xf32>
    %8 = tpu.matmul %7, %6, %cst_7 {dimension_numbers = #tpu.dot_dimension_numbers<[1], [0], [0], [1], [0, 0, 1, 1], [], []>} : vector<16x32xf32>, vector<32x2xf32>, vector<16x2xf32> -> vector<16x2xf32>
    %c0_8 = arith.constant 0 : index
    %c0_9 = arith.constant 0 : index
    %9 = vector.load %arg5[%c0_8, %c0_9] : memref<16x1xf32, #tpu.memory_space<vmem>>, vector<16x1xf32>
    %10 = vector.broadcast %9 : vector<16x1xf32> to vector<16x2xf32>
    %11 = arith.addf %8, %10 : vector<16x2xf32>
    %12 = math.tanh %11 : vector<16x2xf32>
    %c0_10 = arith.constant 0 : index
    %c0_11 = arith.constant 0 : index
    %13 = vector.load %arg6[%c0_10, %c0_11] : memref<4x16xf32, #tpu.memory_space<vmem>>, vector<4x16xf32>
    %cst_12 = arith.constant dense<0.000000e+00> : vector<4x2xf32>
    %14 = tpu.matmul %13, %12, %cst_12 {dimension_numbers = #tpu.dot_dimension_numbers<[1], [0], [0], [1], [0, 0, 1, 1], [], []>} : vector<4x16xf32>, vector<16x2xf32>, vector<4x2xf32> -> vector<4x2xf32>
    %c0_13 = arith.constant 0 : index
    %c0_14 = arith.constant 0 : index
    %15 = vector.load %arg7[%c0_13, %c0_14] : memref<4x1xf32, #tpu.memory_space<vmem>>, vector<4x1xf32>
    %16 = vector.broadcast %15 : vector<4x1xf32> to vector<4x2xf32>
    %17 = arith.addf %14, %16 : vector<4x2xf32>
    %cst_15 = arith.constant 5.000000e-01 : f32
    %18 = vector.broadcast %cst_15 : f32 to vector<4x2xf32>
    %19 = arith.mulf %18, %17 : vector<4x2xf32>
    %20 = math.tanh %19 : vector<4x2xf32>
    %cst_16 = arith.constant 5.000000e-01 : f32
    %21 = vector.broadcast %cst_16 : f32 to vector<4x2xf32>
    %22 = arith.mulf %21, %20 : vector<4x2xf32>
    %cst_17 = arith.constant 5.000000e-01 : f32
    %23 = vector.broadcast %cst_17 : f32 to vector<4x2xf32>
    %24 = arith.addf %22, %23 : vector<4x2xf32>
    %c0_18 = arith.constant 0 : index
    %c0_19 = arith.constant 0 : index
    %25 = vector.load %arg8[%c0_18, %c0_19] : memref<4x2xf32, #tpu.memory_space<vmem>>, vector<4x2xf32>
    tpu.vector_store %arg8[%c0_18, %c0_19], %24 {strides = array<i32>} : memref<4x2xf32, #tpu.memory_space<vmem>>, vector<4x2xf32>,
    return
  }
  func.func @transform_0(%arg0: i32) -> (i32, i32) {
    %c0_i32 = arith.constant 0 : i32
    %c0_i32_0 = arith.constant 0 : i32
    return %c0_i32, %arg0 : i32, i32
  }
  func.func @transform_1(%arg0: i32) -> (i32, i32) {
    %c0_i32 = arith.constant 0 : i32
    %c0_i32_0 = arith.constant 0 : i32
    %c0_i32_1 = arith.constant 0 : i32
    return %c0_i32, %c0_i32_0 : i32, i32
  }
  func.func @transform_2(%arg0: i32) -> (i32, i32) {
    %c0_i32 = arith.constant 0 : i32
    %c0_i32_0 = arith.constant 0 : i32
    %c0_i32_1 = arith.constant 0 : i32
    return %c0_i32, %c0_i32_0 : i32, i32
  }
  func.func @transform_3(%arg0: i32) -> (i32, i32) {
    %c0_i32 = arith.constant 0 : i32
    %c0_i32_0 = arith.constant 0 : i32
    %c0_i32_1 = arith.constant 0 : i32
    return %c0_i32, %c0_i32_0 : i32, i32
  }
  func.func @transform_4(%arg0: i32) -> (i32, i32) {
    %c0_i32 = arith.constant 0 : i32
    %c0_i32_0 = arith.constant 0 : i32
    %c0_i32_1 = arith.constant 0 : i32
    return %c0_i32, %c0_i32_0 : i32, i32
  }
  func.func @transform_5(%arg0: i32) -> (i32, i32) {
    %c0_i32 = arith.constant 0 : i32
    %c0_i32_0 = arith.constant 0 : i32
    %c0_i32_1 = arith.constant 0 : i32
    return %c0_i32, %c0_i32_0 : i32, i32
  }
  func.func @transform_6(%arg0: i32) -> (i32, i32) {
    %c0_i32 = arith.constant 0 : i32
    %c0_i32_0 = arith.constant 0 : i32
    %c0_i32_1 = arith.constant 0 : i32
    return %c0_i32, %c0_i32_0 : i32, i32
  }
  func.func @transform_7(%arg0: i32) -> (i32, i32) {
    %c0_i32 = arith.constant 0 : i32
    %c0_i32_0 = arith.constant 0 : i32
    return %c0_i32, %arg0 : i32, i32
  }
}

</mosaic_0001>

<bundles_post_ra>
// kernel: tpu_custom_call.1
= control target key start
LH: loop header
LB: loop body
LE: loop exit
PB: predicated region body
PF: predicated region fallthrough
CT: control target
= control target key end

     0   :  { %vm55_vm0 = vcmask 64512   ;;  %v424_v3 = vmov 0   ;;  %vm171_vm1 = vcmask 261120   ;;  %v425_v33 = vmov 0.0|0.0   ;;  %s522_s0 = inlined_call_operand.vmem [shape: f32[8,2], index: 0, kind: input, shape index: {}]   ;;  %s523_s1 = inlined_call_operand.vmem [shape: f32[32,8], index: 1, kind: input, shape index: {}]   ;;  %s524_s2 = inlined_call_operand.vmem [shape: f32[32,1], index: 2, kind: input, shape index: {}]   ;;  %s525_s4 = inlined_call_operand.vmem [shape: f32[16,1], index: 4, kind: input, shape index: {}]   ;;  %s526_s6 = inlined_call_operand.vmem [shape: f32[4,1], index: 6, kind: input, shape index: {}]   ;;  %s527_s3 = inlined_call_operand.vmem [shape: f32[16,32], index: 3, kind: input, shape index: {}]   ;;  %s528_s5 = inlined_call_operand.vmem [shape: f32[4,16], index: 5, kind: input, shape index: {}]   ;;  %s529_s7 = inlined_call_operand.vmem [shape: f32[4,2], index: 7, kind: output, shape index: {}]  }
   0x1   :  { %v30_v0 = vld [vmem:[%s522_s0] sm:$0xff]  ;;  %v27_v2 = vld [vmem:[%s523_s1 + $0x8] sm:$0xff]  ;;  %408 = vset.pattern.permute.xlu0 %v424_v3  ;;  %409 = vset.pattern.permute.xlu1 %v424_v3  ;;  %v28_v4 = vld [vmem:[%s523_s1 + $0x10] sm:$0xff]  ;;  %vm426_vm2 = vmmov 0   ;;  %v427_v34 = vmov 0.0   ;;  %vm262_vm3 = vcmask 130048  }
   0x2   :  { %v26_v1 = vld [vmem:[%s523_s1] sm:$0xff]  ;;  %367 = vmatprep.subr.mxu0 %v30_v0  ;;  %v33_v6 = vld [vmem:[%s524_s2 + $0x10] sm:$0xff]  ;;  %v32_v7 = vld [vmem:[%s524_s2 + $0x8] sm:$0xff]  ;;  %vm340_vm4 = vcmask 11264  }
   0x3   :  { %369 = vmatprep.mubr.msk.f32.mxu0 %vm55_vm0, %v26_v1  ;;  %v31_v5 = vld [vmem:[%s524_s2] sm:$0xff]  ;;  %368 = vmatpush3.msra.mxu0 %v30_v0  ;;  %v29_v8 = vld [vmem:[%s523_s1 + $0x18] sm:$0xff]  ;;  %v160_v11 = vld [vmem:[%s525_s4 + $0x8] sm:$0xff] }
   0x4   :  { %37 = vperm.xlu0 %408, %v31_v5   ;;  %370 = vmatmul.mubr.msk.f32.vlgmr.msra.gmra.mrb[0].mxu0 %vm55_vm0, %v27_v2  ;;  %v34_v9 = vld [vmem:[%s524_s2 + $0x18] sm:$0xff]  ;;  %v159_v10 = vld [vmem:[%s525_s4] sm:$0xff]  ;;  %v158_v32 = vld [vmem:[%s527_s3 + $0x8] sm:$0xff] }
   0x5   :  { %47 = vperm.xlu1 %409, %v33_v6   ;;  %372 = vmatprep.mubr.msk.f32.mxu0 %vm55_vm0, %v28_v4  ;;  %v256_v12 = vld [vmem:[%s526_s6] sm:$0xf] }
   0x6   :  { %v157_v13 = vld [vmem:[%s527_s3] sm:$0xff]  ;;  %401 = vmatprep.subr.bf16.mxu0 %v425_v33 }
   0x7   :  { %383 = vmatprep.mubr.msk.f32.mxu1 %vm171_vm1, %v157_v13  ;;  %v255_v44 = vld [vmem:[%s528_s5] sm:$0xf] }
   0x8   :  { %42 = vperm.xlu0 %408, %v32_v7   ;;  %373 = vmatmul.mubr.msk.f32.gmra.mrb[2].mxu0 %vm55_vm0, %v29_v8 }
   0x9   :  { %52 = vperm.xlu1 %409, %v34_v9   ;;  %390 = vmatprep.mubr.msk.f32.mxu0 %vm426_vm2, %v427_v34 }
   0xc   :  { %163 = vperm.xlu0 %408, %v159_v10  }
   0xd   :  { %168 = vperm.xlu1 %409, %v160_v11  }
  0x10   :  { %259 = vperm.xlu0 %408, %v256_v12  }
  0x83   :  { %v38_v14 = vpop.permute.xlu0 %37 }
  0x84   :  { %v48_v15 = vpop.permute.xlu1 %47 }
  0x87   :  { %v43_v16 = vpop.permute.xlu0 %42 }
  0x88   :  { %v53_v21 = vpop.permute.xlu1 %52 }
  0x8b   :  { %v164_v37 = vpop.permute.xlu0 %163 }
  0x8c   :  { %v169_v35 = vpop.permute.xlu1 %168 }
  0x8f   :  { %v260_v45 = vpop.permute.xlu0 %259 }
  0xd7   :  { %v371_v17 = vpop.f32.mrb[0].mxu0 }
  0xd8   :  { %v140_v18 = vadd.f32 %v371_v17, %v43_v16  ;;  %v134_v19 = vpop.f32.mrb[1].mxu0 }
  0xd9   :  { %v135_v20 = vadd.f32 %v134_v19, %v38_v14 }
  0xda   :  { %410 = vtanh.f32 %v140_v18 }
  0xdb   :  { %412 = vtanh.f32 %v135_v20  ;;  %v374_v22 = vpop.f32.mrb[2].mxu0 }
  0xdc   :  { %v150_v23 = vadd.f32 %v374_v22, %v53_v21  ;;  %v144_v24 = vpop.f32.mrb[3].mxu0 }
  0xdd   :  { %v145_v25 = vadd.f32 %v144_v24, %v48_v15 }
  0xde   :  { %414 = vtanh.f32 %v150_v23 }
  0xdf   :  { %416 = vtanh.f32 %v145_v25 }
  0xe4   :  { %v411_v26 = vpop.eup %410 }
  0xe5   :  { %v413_v27 = vpop.eup %412 }
  0xe6   :  { %v393_v28 = vpack.c.bf16 %v411_v26, %v413_v27 }
  0xe8   :  { %v415_v29 = vpop.eup %414  ;;  %394 = vmatprep.subr.bf16.mxu1 %v393_v28 }
  0xe9   :  { %v417_v30 = vpop.eup %416  ;;  %396 = vmatpush3.bf16.msra.mxu1 %v393_v28 }
  0xea   :  { %v397_v31 = vpack.c.bf16 %v415_v29, %v417_v30 }
  0xec   :  { %398 = vmatprep.subr.bf16.mxu1 %v397_v31 }
  0xed   :  { %400 = vmatpush3.bf16.msra.mxu1 %v397_v31 }
  0xf0   :  { %384 = vmatmul.mubr.msk.f32.vlgmr.msra.gmra.mrb[0].mxu1 %vm171_vm1, %v158_v32 }
 0x1c3   :  { %v385_v36 = vpop.f32.mrb[0].mxu1 }
 0x1c4   :  { %v250_v38 = vadd.f32 %v385_v36, %v169_v35  ;;  %v244_v39 = vpop.f32.mrb[1].mxu1 }
 0x1c5   :  { %v245_v40 = vadd.f32 %v244_v39, %v164_v37 }
 0x1c6   :  { %418 = vtanh.f32 %v250_v38 }
 0x1c7   :  { %420 = vtanh.f32 %v245_v40 }
 0x1d0   :  { %v419_v41 = vpop.eup %418 }
 0x1d1   :  { %v421_v42 = vpop.eup %420 }
 0x1d2   :  { %v402_v43 = vpack.c.bf16 %v419_v41, %v421_v42 }
 0x1d4   :  { %403 = vmatpush3.bf16.msra.mxu0 %v402_v43 }
 0x1d7   :  { %391 = vmatmul.mubr.msk.f32.vlgmr.msra.gmra.mrb[4].mxu0 %vm262_vm3, %v255_v44 }
 0x2aa   :  { %v332_v46 = vpop.f32.mrb[4].mxu0 }
 0x2ab   :  { %v333_v47 = vadd.f32 %v332_v46, %v260_v45  ;;  %v392_v48 = vpop.f32.mrb[5].mxu0 }
 0x2ad   :  { %v336_v49 = vmul.f32 0.5, %v333_v47 }
 0x2af   :  { %422 = vtanh.f32 %v336_v49 }
 0x2b9   :  { %v423_v50 = vpop.eup %422 }
 0x2ba   :  { %v338_v51 = vmul.f32 0.5, %v423_v50 }
 0x2bc   :  { %v339_v52 = vadd.f32 0.5, %v338_v51 }
 0x2be   :  { %341 = vst.msk [vmem:[%s529_s7] sm:$0xf] %vm340_vm4, %v339_v52 }

</bundles_post_ra>
